<compile_context>
chip_gen: v5e
topology: v5e:2x2
jax: 0.10.0
libtpu: 0.0.40
codegen_flags: <defaults>
</compile_context>

<pallas_src>
import jax
import jax.numpy as jnp
from jax.experimental import pallas as pl
from jax.experimental.pallas import tpu as pltpu

INPUT_DIM = 2
HIDDEN_DIM = 64
IN_FEATS = INPUT_DIM + 2      # x (2) + t (1) + c (1)
XT_FEATS = INPUT_DIM + 1      # x (2) + t (1); c is folded into the layer-1 bias

# Batch tile (lane axis).  Live f32 (64, T) intermediates + double-buffered I/O
# stay ~10-13 MiB at T=16384 -> fits the 32 MiB scoped VMEM limit set below on
# every generation (v5e/v6e: 128 MiB physical, v7x: 64 MiB physical per TC).
TILE_B_DEFAULT = 16384


def _round_up(n, m):
    return (n + m - 1) // m * m


def _cdiv(a, b):
    return -(-a // b)


def mlp_kernel(inT_ref,
               w1_ref, b1_ref,
               w2_ref, b2_ref,
               w3_ref, b3_ref,
               w4_ref, b4_ref,
               w5_ref, b5_ref,
               o_ref):
    """Full forward in (features, batch) layout, all f32.

    Weights are stored transposed as (out_features, in_features); biases are
    (out_features, 1) so they lane-broadcast over the batch tile.  Every dot
    accumulates in f32 on the MXU.
    """

    def layer(h, w_ref, b_ref):
        return jnp.dot(w_ref[...], h,
                       preferred_element_type=jnp.float32) + b_ref[...]

    h = jnp.maximum(layer(inT_ref[...], w1_ref, b1_ref), 0.0)   # (64, TILE_B)
    h = jnp.maximum(layer(h, w2_ref, b2_ref), 0.0)
    h = jnp.maximum(layer(h, w3_ref, b3_ref), 0.0)
    h = jnp.maximum(layer(h, w4_ref, b4_ref), 0.0)
    o_ref[...] = layer(h, w5_ref, b5_ref).astype(o_ref.dtype)   # (2, TILE_B)


def pack_params(params):
    """One-time prep (outside the per-call jit): transposed weights, column biases."""
    (w1, b1), (w2, b2), (w3, b3), (w4, b4), (w5, b5) = params
    f32 = jnp.float32
    return {
        "w1T": jnp.asarray(w1[:XT_FEATS, :].T, f32),   # (64, 3)
        "w1_c": jnp.asarray(w1[XT_FEATS, :], f32),     # (64,) row multiplied by c
        "b1": jnp.asarray(b1, f32),                    # (64,)
        "w2T": jnp.asarray(w2.T, f32),                 # (64, 64)
        "b2c": jnp.asarray(b2.reshape(-1, 1), f32),
        "w3T": jnp.asarray(w3.T, f32),
        "b3c": jnp.asarray(b3.reshape(-1, 1), f32),
        "w4T": jnp.asarray(w4.T, f32),
        "b4c": jnp.asarray(b4.reshape(-1, 1), f32),
        "w5T": jnp.asarray(w5.T, f32),                 # (2, 64)
        "b5c": jnp.asarray(b5.reshape(-1, 1), f32),
    }


@jax.jit
def simple_nn_forward(x, t, c, packed):
    """x: (B, 2) f32, t: (B, 1) f32, c: (1,) f32 -> (B, 2) f32."""
    B = x.shape[0]

    # Fold the broadcast conditioning scalar into the first-layer bias (exact, f32).
    b1c = (packed["b1"] + c[0] * packed["w1_c"]).reshape(-1, 1)   # (64, 1)

    # Batch on lanes.  Choose tile_b so that:
    #   * there are >=2 grid steps when there is enough work (v7x: 2 TCs), and
    #   * the batch is split evenly (last tile not mostly padding).
    b128 = _round_up(B, 128)
    n_steps = max(_cdiv(b128, TILE_B_DEFAULT), 2 if b128 >= 256 else 1)
    tile_b = _round_up(_cdiv(b128, n_steps), 128)
    n_steps = _cdiv(b128, tile_b)
    b_pad = tile_b * n_steps

    xt = jnp.concatenate([x, t], axis=1).astype(jnp.float32)     # (B, 3)
    xt = jnp.pad(xt, ((0, b_pad - B), (0, 0)))
    inT = xt.T                                                   # (3, b_pad)

    def batch_spec(rows):
        # tiled along the batch (lane) axis
        return pl.BlockSpec((rows, tile_b), lambda i: (0, i))

    def resident_spec(shape):
        # constant index_map -> weights/biases stay VMEM-resident across steps
        return pl.BlockSpec(shape, lambda i: (0, 0))

    args = (inT,
            packed["w1T"], b1c,
            packed["w2T"], packed["b2c"],
            packed["w3T"], packed["b3c"],
            packed["w4T"], packed["b4c"],
            packed["w5T"], packed["b5c"])
    in_specs = [batch_spec(XT_FEATS)] + [resident_spec(a.shape) for a in args[1:]]

    flops = 2 * b_pad * (XT_FEATS * HIDDEN_DIM
                         + 3 * HIDDEN_DIM * HIDDEN_DIM
                         + HIDDEN_DIM * INPUT_DIM)
    weight_elems = (XT_FEATS * HIDDEN_DIM + 3 * HIDDEN_DIM * HIDDEN_DIM
                    + HIDDEN_DIM * INPUT_DIM + 4 * HIDDEN_DIM + INPUT_DIM)
    bytes_accessed = 4 * (b_pad * (XT_FEATS + INPUT_DIM) + weight_elems)

    outT = pl.pallas_call(
        mlp_kernel,
        out_shape=jax.ShapeDtypeStruct((INPUT_DIM, b_pad), jnp.float32),
        grid=(n_steps,),
        in_specs=in_specs,
        out_specs=batch_spec(INPUT_DIM),
        compiler_params=pltpu.CompilerParams(
            dimension_semantics=("parallel",),
            vmem_limit_bytes=32 * 1024 * 1024),
        cost_estimate=pl.CostEstimate(
            flops=flops, transcendentals=0, bytes_accessed=bytes_accessed),
    )(*args)

    # drop batch padding, return in the PyTorch (batch, features) convention
    return outT[:, :B].T


def init_params(key, input_dim=INPUT_DIM, hidden_dim=HIDDEN_DIM):
    """Deterministic init mirroring nn.Linear's U(-1/sqrt(fan_in), 1/sqrt(fan_in))."""
    dims = [(input_dim + 2, hidden_dim),
            (hidden_dim, hidden_dim),
            (hidden_dim, hidden_dim),
            (hidden_dim, hidden_dim),
            (hidden_dim, input_dim)]
    params = []
    for (fan_in, fan_out) in dims:
        key, kw, kb = jax.random.split(key, 3)
        bound = 1.0 / jnp.sqrt(fan_in)
        # stored as (fan_in, fan_out); pack_params transposes for the kernel
        w = jax.random.uniform(kw, (fan_in, fan_out), jnp.float32, -bound, bound)
        b = jax.random.uniform(kb, (fan_out,), jnp.float32, -bound, bound)
        params.append((w, b))
    return params


def reference_forward(x, t, c, params):
    """Pure f32 JAX reference with torch.hstack semantics."""
    B = x.shape[0]
    h = jnp.concatenate([x, t, jnp.broadcast_to(c.reshape(1, 1), (B, 1))], axis=1)
    for i, (w, b) in enumerate(params):
        h = h @ w + b
        if i < len(params) - 1:
            h = jnp.maximum(h, 0.0)
    return h


if __name__ == "__main__":
    key = jax.random.PRNGKey(0)
    kp, kx, kt, kc = jax.random.split(key, 4)

    params = init_params(kp)
    packed = pack_params(params)

    # NOTE: at tiny B the pallas_call fixed cost dominates; the tiling pays off
    # for B in the thousands.  Small B here only for the correctness demo.
    B = 8
    x = jax.random.normal(kx, (B, INPUT_DIM), jnp.float32)
    t = jax.random.uniform(kt, (B, 1), jnp.float32)
    c = jax.random.normal(kc, (1,), jnp.float32)

    out = simple_nn_forward(x, t, c, packed)
    out = jax.block_until_ready(out)

    ref = reference_forward(x, t, c, params)
    assert out.shape == (B, INPUT_DIM)
    # all-f32 kernel vs f32 reference -> tight tolerance
    assert jnp.allclose(out, ref, atol=1e-4, rtol=1e-4), "mismatch vs JAX reference"

    print("KERNEL_OK")
</pallas_src>

<mosaic_0001>
module attributes {stable_mosaic.version = 11 : i64} {
  func.func @mlp_kernel(%arg0: i32, %arg1: memref<3x128xf32, #tpu.memory_space<vmem>>, %arg2: memref<64x3xf32, #tpu.memory_space<vmem>>, %arg3: memref<64x1xf32, #tpu.memory_space<vmem>>, %arg4: memref<64x64xf32, #tpu.memory_space<vmem>>, %arg5: memref<64x1xf32, #tpu.memory_space<vmem>>, %arg6: memref<64x64xf32, #tpu.memory_space<vmem>>, %arg7: memref<64x1xf32, #tpu.memory_space<vmem>>, %arg8: memref<64x64xf32, #tpu.memory_space<vmem>>, %arg9: memref<64x1xf32, #tpu.memory_space<vmem>>, %arg10: memref<2x64xf32, #tpu.memory_space<vmem>>, %arg11: memref<2x1xf32, #tpu.memory_space<vmem>>, %arg12: memref<2x128xf32, #tpu.memory_space<vmem>>) attributes {dimension_semantics = [#tpu.dimension_semantics<parallel>], iteration_bounds = array<i64: 1>, scalar_prefetch = 0 : i64, scratch_operands = 0 : i64, tpu.core_type = #tpu.core_type<tc>, window_params = [{transform_indices = @transform_0, window_bounds = array<i64: 3, 128>}, {pipeline_mode = #tpu.pipeline_mode<synchronous>, transform_indices = @transform_1, window_bounds = array<i64: 64, 3>}, {pipeline_mode = #tpu.pipeline_mode<synchronous>, transform_indices = @transform_2, window_bounds = array<i64: 64, 1>}, {pipeline_mode = #tpu.pipeline_mode<synchronous>, transform_indices = @transform_3, window_bounds = array<i64: 64, 64>}, {pipeline_mode = #tpu.pipeline_mode<synchronous>, transform_indices = @transform_4, window_bounds = array<i64: 64, 1>}, {pipeline_mode = #tpu.pipeline_mode<synchronous>, transform_indices = @transform_5, window_bounds = array<i64: 64, 64>}, {pipeline_mode = #tpu.pipeline_mode<synchronous>, transform_indices = @transform_6, window_bounds = array<i64: 64, 1>}, {pipeline_mode = #tpu.pipeline_mode<synchronous>, transform_indices = @transform_7, window_bounds = array<i64: 64, 64>}, {pipeline_mode = #tpu.pipeline_mode<synchronous>, transform_indices = @transform_8, window_bounds = array<i64: 64, 1>}, {pipeline_mode = #tpu.pipeline_mode<synchronous>, transform_indices = @transform_9, window_bounds = array<i64: 2, 64>}, {pipeline_mode = #tpu.pipeline_mode<synchronous>, transform_indices = @transform_10, window_bounds = array<i64: 2, 1>}, {transform_indices = @transform_11, window_bounds = array<i64: 2, 128>}]} {
    %c0 = arith.constant 0 : index
    %c0_0 = arith.constant 0 : index
    %0 = vector.load %arg1[%c0, %c0_0] : memref<3x128xf32, #tpu.memory_space<vmem>>, vector<3x128xf32>
    %c0_1 = arith.constant 0 : index
    %c0_2 = arith.constant 0 : index
    %1 = vector.load %arg2[%c0_1, %c0_2] : memref<64x3xf32, #tpu.memory_space<vmem>>, vector<64x3xf32>
    %cst = arith.constant dense<0.000000e+00> : vector<64x128xf32>
    %2 = tpu.matmul %1, %0, %cst {dimension_numbers = #tpu.dot_dimension_numbers<[1], [0], [0], [1], [0, 0, 1, 1], [], []>} : vector<64x3xf32>, vector<3x128xf32>, vector<64x128xf32> -> vector<64x128xf32>
    %c0_3 = arith.constant 0 : index
    %c0_4 = arith.constant 0 : index
    %3 = vector.load %arg3[%c0_3, %c0_4] : memref<64x1xf32, #tpu.memory_space<vmem>>, vector<64x1xf32>
    %4 = vector.broadcast %3 : vector<64x1xf32> to vector<64x128xf32>
    %5 = arith.addf %2, %4 : vector<64x128xf32>
    %cst_5 = arith.constant 0.000000e+00 : f32
    %6 = vector.broadcast %cst_5 : f32 to vector<64x128xf32>
    %7 = arith.maximumf %5, %6 : vector<64x128xf32>
    %c0_6 = arith.constant 0 : index
    %c0_7 = arith.constant 0 : index
    %8 = vector.load %arg4[%c0_6, %c0_7] : memref<64x64xf32, #tpu.memory_space<vmem>>, vector<64x64xf32>
    %cst_8 = arith.constant dense<0.000000e+00> : vector<64x128xf32>
    %9 = tpu.matmul %8, %7, %cst_8 {dimension_numbers = #tpu.dot_dimension_numbers<[1], [0], [0], [1], [0, 0, 1, 1], [], []>} : vector<64x64xf32>, vector<64x128xf32>, vector<64x128xf32> -> vector<64x128xf32>
    %c0_9 = arith.constant 0 : index
    %c0_10 = arith.constant 0 : index
    %10 = vector.load %arg5[%c0_9, %c0_10] : memref<64x1xf32, #tpu.memory_space<vmem>>, vector<64x1xf32>
    %11 = vector.broadcast %10 : vector<64x1xf32> to vector<64x128xf32>
    %12 = arith.addf %9, %11 : vector<64x128xf32>
    %cst_11 = arith.constant 0.000000e+00 : f32
    %13 = vector.broadcast %cst_11 : f32 to vector<64x128xf32>
    %14 = arith.maximumf %12, %13 : vector<64x128xf32>
    %c0_12 = arith.constant 0 : index
    %c0_13 = arith.constant 0 : index
    %15 = vector.load %arg6[%c0_12, %c0_13] : memref<64x64xf32, #tpu.memory_space<vmem>>, vector<64x64xf32>
    %cst_14 = arith.constant dense<0.000000e+00> : vector<64x128xf32>
    %16 = tpu.matmul %15, %14, %cst_14 {dimension_numbers = #tpu.dot_dimension_numbers<[1], [0], [0], [1], [0, 0, 1, 1], [], []>} : vector<64x64xf32>, vector<64x128xf32>, vector<64x128xf32> -> vector<64x128xf32>
    %c0_15 = arith.constant 0 : index
    %c0_16 = arith.constant 0 : index
    %17 = vector.load %arg7[%c0_15, %c0_16] : memref<64x1xf32, #tpu.memory_space<vmem>>, vector<64x1xf32>
    %18 = vector.broadcast %17 : vector<64x1xf32> to vector<64x128xf32>
    %19 = arith.addf %16, %18 : vector<64x128xf32>
    %cst_17 = arith.constant 0.000000e+00 : f32
    %20 = vector.broadcast %cst_17 : f32 to vector<64x128xf32>
    %21 = arith.maximumf %19, %20 : vector<64x128xf32>
    %c0_18 = arith.constant 0 : index
    %c0_19 = arith.constant 0 : index
    %22 = vector.load %arg8[%c0_18, %c0_19] : memref<64x64xf32, #tpu.memory_space<vmem>>, vector<64x64xf32>
    %cst_20 = arith.constant dense<0.000000e+00> : vector<64x128xf32>
    %23 = tpu.matmul %22, %21, %cst_20 {dimension_numbers = #tpu.dot_dimension_numbers<[1], [0], [0], [1], [0, 0, 1, 1], [], []>} : vector<64x64xf32>, vector<64x128xf32>, vector<64x128xf32> -> vector<64x128xf32>
    %c0_21 = arith.constant 0 : index
    %c0_22 = arith.constant 0 : index
    %24 = vector.load %arg9[%c0_21, %c0_22] : memref<64x1xf32, #tpu.memory_space<vmem>>, vector<64x1xf32>
    %25 = vector.broadcast %24 : vector<64x1xf32> to vector<64x128xf32>
    %26 = arith.addf %23, %25 : vector<64x128xf32>
    %cst_23 = arith.constant 0.000000e+00 : f32
    %27 = vector.broadcast %cst_23 : f32 to vector<64x128xf32>
    %28 = arith.maximumf %26, %27 : vector<64x128xf32>
    %c0_24 = arith.constant 0 : index
    %c0_25 = arith.constant 0 : index
    %29 = vector.load %arg10[%c0_24, %c0_25] : memref<2x64xf32, #tpu.memory_space<vmem>>, vector<2x64xf32>
    %cst_26 = arith.constant dense<0.000000e+00> : vector<2x128xf32>
    %30 = tpu.matmul %29, %28, %cst_26 {dimension_numbers = #tpu.dot_dimension_numbers<[1], [0], [0], [1], [0, 0, 1, 1], [], []>} : vector<2x64xf32>, vector<64x128xf32>, vector<2x128xf32> -> vector<2x128xf32>
    %c0_27 = arith.constant 0 : index
    %c0_28 = arith.constant 0 : index
    %31 = vector.load %arg11[%c0_27, %c0_28] : memref<2x1xf32, #tpu.memory_space<vmem>>, vector<2x1xf32>
    %32 = vector.broadcast %31 : vector<2x1xf32> to vector<2x128xf32>
    %33 = arith.addf %30, %32 : vector<2x128xf32>
    %c0_29 = arith.constant 0 : index
    %c0_30 = arith.constant 0 : index
    %34 = vector.load %arg12[%c0_29, %c0_30] : memref<2x128xf32, #tpu.memory_space<vmem>>, vector<2x128xf32>
    tpu.vector_store %arg12[%c0_29, %c0_30], %33 {strides = array<i32>} : memref<2x128xf32, #tpu.memory_space<vmem>>, vector<2x128xf32>,
    return
  }
  func.func @transform_0(%arg0: i32) -> (i32, i32) {
    %c0_i32 = arith.constant 0 : i32
    %c0_i32_0 = arith.constant 0 : i32
    return %c0_i32, %arg0 : i32, i32
  }
  func.func @transform_1(%arg0: i32) -> (i32, i32) {
    %c0_i32 = arith.constant 0 : i32
    %c0_i32_0 = arith.constant 0 : i32
    %c0_i32_1 = arith.constant 0 : i32
    return %c0_i32, %c0_i32_0 : i32, i32
  }
  func.func @transform_2(%arg0: i32) -> (i32, i32) {
    %c0_i32 = arith.constant 0 : i32
    %c0_i32_0 = arith.constant 0 : i32
    %c0_i32_1 = arith.constant 0 : i32
    return %c0_i32, %c0_i32_0 : i32, i32
  }
  func.func @transform_3(%arg0: i32) -> (i32, i32) {
    %c0_i32 = arith.constant 0 : i32
    %c0_i32_0 = arith.constant 0 : i32
    %c0_i32_1 = arith.constant 0 : i32
    return %c0_i32, %c0_i32_0 : i32, i32
  }
  func.func @transform_4(%arg0: i32) -> (i32, i32) {
    %c0_i32 = arith.constant 0 : i32
    %c0_i32_0 = arith.constant 0 : i32
    %c0_i32_1 = arith.constant 0 : i32
    return %c0_i32, %c0_i32_0 : i32, i32
  }
  func.func @transform_5(%arg0: i32) -> (i32, i32) {
    %c0_i32 = arith.constant 0 : i32
    %c0_i32_0 = arith.constant 0 : i32
    %c0_i32_1 = arith.constant 0 : i32
    return %c0_i32, %c0_i32_0 : i32, i32
  }
  func.func @transform_6(%arg0: i32) -> (i32, i32) {
    %c0_i32 = arith.constant 0 : i32
    %c0_i32_0 = arith.constant 0 : i32
    %c0_i32_1 = arith.constant 0 : i32
    return %c0_i32, %c0_i32_0 : i32, i32
  }
  func.func @transform_7(%arg0: i32) -> (i32, i32) {
    %c0_i32 = arith.constant 0 : i32
    %c0_i32_0 = arith.constant 0 : i32
    %c0_i32_1 = arith.constant 0 : i32
    return %c0_i32, %c0_i32_0 : i32, i32
  }
  func.func @transform_8(%arg0: i32) -> (i32, i32) {
    %c0_i32 = arith.constant 0 : i32
    %c0_i32_0 = arith.constant 0 : i32
    %c0_i32_1 = arith.constant 0 : i32
    return %c0_i32, %c0_i32_0 : i32, i32
  }
  func.func @transform_9(%arg0: i32) -> (i32, i32) {
    %c0_i32 = arith.constant 0 : i32
    %c0_i32_0 = arith.constant 0 : i32
    %c0_i32_1 = arith.constant 0 : i32
    return %c0_i32, %c0_i32_0 : i32, i32
  }
  func.func @transform_10(%arg0: i32) -> (i32, i32) {
    %c0_i32 = arith.constant 0 : i32
    %c0_i32_0 = arith.constant 0 : i32
    %c0_i32_1 = arith.constant 0 : i32
    return %c0_i32, %c0_i32_0 : i32, i32
  }
  func.func @transform_11(%arg0: i32) -> (i32, i32) {
    %c0_i32 = arith.constant 0 : i32
    %c0_i32_0 = arith.constant 0 : i32
    return %c0_i32, %arg0 : i32, i32
  }
}

</mosaic_0001>

<bundles_post_ra>
// kernel: simple_nn_forward.1
= control target key start
LH: loop header
LB: loop body
LE: loop exit
PB: predicated region body
PF: predicated region fallthrough
CT: control target
= control target key end

     0   :  { %vm120_vm0 = vcmask 1042432   ;;  %v634_v0 = vmov 0   ;;  %vm95_vm1 = vcmask 23552   ;;  %vm229_vm2 = vcmask 523264   ;;  %s932_s2 = inlined_call_operand.vmem [shape: f32[64,1], index: 2, kind: input, shape index: {}]   ;;  %s933_s0 = inlined_call_operand.vmem [shape: f32[3,128], index: 0, kind: input, shape index: {}]   ;;  %s934_s1 = inlined_call_operand.vmem [shape: f32[64,3], index: 1, kind: input, shape index: {}]   ;;  %s935_s4 = inlined_call_operand.vmem [shape: f32[64,1], index: 4, kind: input, shape index: {}]   ;;  %s936_s6 = inlined_call_operand.vmem [shape: f32[64,1], index: 6, kind: input, shape index: {}]   ;;  %s937_s8 = inlined_call_operand.vmem [shape: f32[64,1], index: 8, kind: input, shape index: {}]   ;;  %s938_s10 = inlined_call_operand.vmem [shape: f32[2,1], index: 10, kind: input, shape index: {}]   ;;  %s939_s3 = inlined_call_operand.vmem [shape: f32[64,64], index: 3, kind: input, shape index: {}]   ;;  %s940_s5 = inlined_call_operand.vmem [shape: f32[64,64], index: 5, kind: input, shape index: {}]   ;;  %s941_s7 = inlined_call_operand.vmem [shape: f32[64,64], index: 7, kind: input, shape index: {}]   ;;  %s942_s9 = inlined_call_operand.vmem [shape: f32[2,64], index: 9, kind: input, shape index: {}]   ;;  %s943_s11 = inlined_call_operand.vmem [shape: f32[2,128], index: 11, kind: output, shape index: {}]  }
   0x1   :  { %632 = vset.pattern.permute.xlu1 %v634_v0  ;;  %631 = vset.pattern.permute.xlu0 %v634_v0  ;;  %v54_v1 = vld [vmem:[%s932_s2 + $0x38] sm:$0xff]  ;;  %v52_v2 = vld [vmem:[%s932_s2 + $0x28] sm:$0xff]  ;;  %v38_v3 = vld [vmem:[%s933_s0] sm:$0x7] }
   0x2   :  { %92 = vperm.xlu0 %631, %v54_v1   ;;  %82 = vperm.xlu1 %632, %v52_v2   ;;  %v39_v4 = vld [vmem:[%s934_s1] sm:$0xff]  ;;  %v50_v5 = vld [vmem:[%s932_s2 + $0x18] sm:$0xff]  ;;  %v53_v6 = vld [vmem:[%s932_s2 + $0x30] sm:$0xff] }
   0x3   :  { %596 = vmatpush.msk.msra.mxu0 %vm120_vm0, %v38_v3  ;;  %633 = vset.pattern.permute.xlu2 %v634_v0  ;;  %v51_v7 = vld [vmem:[%s932_s2 + $0x20] sm:$0xff]  ;;  %v40_v8 = vld [vmem:[%s934_s1 + $0x8] sm:$0xff]  ;;  %v49_v9 = vld [vmem:[%s932_s2 + $0x10] sm:$0xff] }
   0x4   :  { %597 = vmatmul.msk.f32.vlgmr.msra.gmra.mxu0 %vm95_vm1, %v39_v4  ;;  %72 = vperm.xlu2 %633, %v50_v5   ;;  %v48_v10 = vld [vmem:[%s932_s2 + $0x8] sm:$0xff]  ;;  %v47_v11 = vld [vmem:[%s932_s2] sm:$0xff]  ;;  %v41_v12 = vld [vmem:[%s934_s1 + $0x10] sm:$0xff] }
   0x5   :  { %v188_v13 = vld [vmem:[%s935_s4 + $0x38] sm:$0xff]  ;;  %v187_v14 = vld [vmem:[%s935_s4 + $0x30] sm:$0xff]  ;;  %v186_v15 = vld [vmem:[%s935_s4 + $0x28] sm:$0xff] }
   0x6   :  { %v42_v16 = vld [vmem:[%s934_s1 + $0x18] sm:$0xff]  ;;  %v185_v17 = vld [vmem:[%s935_s4 + $0x20] sm:$0xff]  ;;  %v183_v19 = vld [vmem:[%s935_s4 + $0x10] sm:$0xff] }
   0x7   :  { %v184_v18 = vld [vmem:[%s935_s4 + $0x18] sm:$0xff]  ;;  %v43_v20 = vld [vmem:[%s934_s1 + $0x20] sm:$0xff]  ;;  %v182_v21 = vld [vmem:[%s935_s4 + $0x8] sm:$0xff] }
   0x8   :  { %v181_v22 = vld [vmem:[%s935_s4] sm:$0xff]  ;;  %v318_v23 = vld [vmem:[%s936_s6 + $0x38] sm:$0xff]  ;;  %v44_v24 = vld [vmem:[%s934_s1 + $0x28] sm:$0xff] }
   0x9   :  { %v317_v25 = vld [vmem:[%s936_s6 + $0x30] sm:$0xff]  ;;  %v316_v26 = vld [vmem:[%s936_s6 + $0x28] sm:$0xff]  ;;  %v315_v27 = vld [vmem:[%s936_s6 + $0x20] sm:$0xff] }
   0xa   :  { %87 = vperm.xlu0 %631, %v53_v6   ;;  %77 = vperm.xlu1 %632, %v51_v7   ;;  %v45_v28 = vld [vmem:[%s934_s1 + $0x30] sm:$0xff]  ;;  %v314_v29 = vld [vmem:[%s936_s6 + $0x18] sm:$0xff]  ;;  %v312_v31 = vld [vmem:[%s936_s6 + $0x8] sm:$0xff] }
   0xb   :  { %v313_v30 = vld [vmem:[%s936_s6 + $0x10] sm:$0xff]  ;;  %v46_v32 = vld [vmem:[%s934_s1 + $0x38] sm:$0xff]  ;;  %v311_v33 = vld [vmem:[%s936_s6] sm:$0xff] }
   0xc   :  { %598 = vmatmul.msk.f32.gmra.mxu0 %vm95_vm1, %v40_v8  ;;  %67 = vperm.xlu2 %633, %v49_v9   ;;  %v447_v34 = vld [vmem:[%s937_s8 + $0x38] sm:$0xff]  ;;  %v446_v35 = vld [vmem:[%s937_s8 + $0x30] sm:$0xff]  ;;  %v445_v36 = vld [vmem:[%s937_s8 + $0x28] sm:$0xff] }
   0xd   :  { %v444_v37 = vld [vmem:[%s937_s8 + $0x20] sm:$0xff]  ;;  %v443_v38 = vld [vmem:[%s937_s8 + $0x18] sm:$0xff]  ;;  %v442_v39 = vld [vmem:[%s937_s8 + $0x10] sm:$0xff] }
   0xe   :  { %v441_v40 = vld [vmem:[%s937_s8 + $0x8] sm:$0xff]  ;;  %v440_v41 = vld [vmem:[%s937_s8] sm:$0xff] }
   0xf   :  { %v562_v42 = vld [vmem:[%s938_s10] sm:$0x3] }
  0x12   :  { %62 = vperm.xlu0 %631, %v48_v10   ;;  %57 = vperm.xlu1 %632, %v47_v11   ;;  %v173_v11 = vld [vmem:[%s939_s3] sm:$0xff] }
  0x14   :  { %599 = vmatmul.msk.f32.gmra.mxu0 %vm95_vm1, %v41_v12  ;;  %226 = vperm.xlu2 %633, %v188_v13   ;;  %v174_v12 = vld [vmem:[%s939_s3 + $0x8] sm:$0xff]  ;;  %v175_v13 = vld [vmem:[%s939_s3 + $0x10] sm:$0xff] }
  0x1a   :  { %221 = vperm.xlu0 %631, %v187_v14   ;;  %216 = vperm.xlu1 %632, %v186_v15   ;;  %v176_v14 = vld [vmem:[%s939_s3 + $0x18] sm:$0xff]  ;;  %v177_v15 = vld [vmem:[%s939_s3 + $0x20] sm:$0xff] }
  0x1c   :  { %600 = vmatmul.msk.f32.gmra.mxu0 %vm95_vm1, %v42_v16  ;;  %211 = vperm.xlu2 %633, %v185_v17   ;;  %v178_v16 = vld [vmem:[%s939_s3 + $0x28] sm:$0xff]  ;;  %v179_v17 = vld [vmem:[%s939_s3 + $0x30] sm:$0xff] }
  0x22   :  { %206 = vperm.xlu0 %631, %v184_v18   ;;  %201 = vperm.xlu1 %632, %v183_v19   ;;  %v180_v18 = vld [vmem:[%s939_s3 + $0x38] sm:$0xff] }
  0x24   :  { %601 = vmatmul.msk.f32.gmra.mxu0 %vm95_vm1, %v43_v20  ;;  %196 = vperm.xlu2 %633, %v182_v21  }
  0x2a   :  { %191 = vperm.xlu0 %631, %v181_v22   ;;  %356 = vperm.xlu1 %632, %v318_v23  }
  0x2c   :  { %602 = vmatmul.msk.f32.gmra.mxu0 %vm95_vm1, %v44_v24  ;;  %351 = vperm.xlu2 %633, %v317_v25  }
  0x32   :  { %346 = vperm.xlu0 %631, %v316_v26   ;;  %341 = vperm.xlu1 %632, %v315_v27  }
  0x34   :  { %603 = vmatmul.msk.f32.gmra.mxu0 %vm95_vm1, %v45_v28  ;;  %336 = vperm.xlu2 %633, %v314_v29  }
  0x3a   :  { %331 = vperm.xlu0 %631, %v313_v30   ;;  %326 = vperm.xlu1 %632, %v312_v31  }
  0x3c   :  { %604 = vmatmul.msk.f32.gmra.mxu0 %vm95_vm1, %v46_v32  ;;  %321 = vperm.xlu2 %633, %v311_v33  }
  0x42   :  { %485 = vperm.xlu0 %631, %v447_v34   ;;  %480 = vperm.xlu1 %632, %v446_v35  }
  0x44   :  { %475 = vperm.xlu2 %633, %v445_v36  }
  0x4a   :  { %470 = vperm.xlu0 %631, %v444_v37   ;;  %465 = vperm.xlu1 %632, %v443_v38  }
  0x4c   :  { %460 = vperm.xlu2 %633, %v442_v39  }
  0x52   :  { %455 = vperm.xlu0 %631, %v441_v40   ;;  %450 = vperm.xlu1 %632, %v440_v41  }
  0x54   :  { %565 = vperm.xlu2 %633, %v562_v42  }
  0x5e   :  { %v73_v52 = vpop.permute.xlu2 %72 }
  0x66   :  { %v68_v0 = vpop.permute.xlu2 %67 }
  0x6e   :  { %v227_v25 = vpop.permute.xlu2 %226 }
  0x74   :  { %v93_v49 = vpop.permute.xlu0 %92  ;;  %v83_v50 = vpop.permute.xlu1 %82 }
  0x76   :  { %v212_v29 = vpop.permute.xlu2 %211 }
  0x7c   :  { %v88_v53 = vpop.permute.xlu0 %87  ;;  %v78_v54 = vpop.permute.xlu1 %77 }
  0x81   :  { %v141_v43 = vpop.f32.mrf.mxu0 }
  0x84   :  { %v63_v3 = vpop.permute.xlu0 %62  ;;  %v58_v4 = vpop.permute.xlu1 %57 }
  0x85   :  { %v142_v7 = vadd.f32 %v141_v43, %v58_v4  ;;  %v197_v43 = vpop.permute.xlu2 %196 }
  0x87   :  { %v165_v10 = vmax.f32 %v142_v7, 0.0 }
  0x89   :  { %v144_v44 = vpop.f32.mrf.mxu0 }
  0x8a   :  { %v145_v5 = vadd.f32 %v144_v44, %v63_v3 }
  0x8c   :  { %v166_v9 = vmax.f32 %v145_v5, 0.0  ;;  %v222_v26 = vpop.permute.xlu0 %221  ;;  %v217_v28 = vpop.permute.xlu1 %216 }
  0x91   :  { %v147_v45 = vpop.f32.mrf.mxu0 }
  0x92   :  { %v148_v1 = vadd.f32 %v147_v45, %v68_v0 }
  0x94   :  { %v167_v8 = vmax.f32 %v148_v1, 0.0  ;;  %v207_v33 = vpop.permute.xlu0 %206  ;;  %v202_v40 = vpop.permute.xlu1 %201 }
  0x99   :  { %v150_v46 = vpop.f32.mrf.mxu0 }
  0x9a   :  { %v151_v62 = vadd.f32 %v150_v46, %v73_v52  ;;  %v304_v52 = vld [vmem:[%s940_s5 + $0x8] sm:$0xff] }
  0x9c   :  { %v168_v6 = vmax.f32 %v151_v62, 0.0  ;;  %v192_v46 = vpop.permute.xlu0 %191  ;;  %v357_v1 = vpop.permute.xlu1 %356 }
  0xa1   :  { %v153_v47 = vpop.f32.mrf.mxu0 }
  0xa2   :  { %v154_v60 = vadd.f32 %v153_v47, %v78_v54  ;;  %v306_v54 = vld [vmem:[%s940_s5 + $0x18] sm:$0xff] }
  0xa4   :  { %v169_v2 = vmax.f32 %v154_v60, 0.0  ;;  %v347_v4 = vpop.permute.xlu0 %346  ;;  %v342_v5 = vpop.permute.xlu1 %341 }
  0xa9   :  { %v156_v48 = vpop.f32.mrf.mxu0 }
  0xaa   :  { %v157_v58 = vadd.f32 %v156_v48, %v83_v50 }
  0xac   :  { %v170_v63 = vmax.f32 %v157_v58, 0.0  ;;  %v310_v58 = vld [vmem:[%s940_s5 + $0x38] sm:$0xff] }
  0xb1   :  { %v159_v51 = vpop.f32.mrf.mxu0 }
  0xb2   :  { %v160_v56 = vadd.f32 %v159_v51, %v88_v53  ;;  %v303_v51 = vld [vmem:[%s940_s5] sm:$0xff]  ;;  %v305_v53 = vld [vmem:[%s940_s5 + $0x10] sm:$0xff] }
  0xb4   :  { %v171_v61 = vmax.f32 %v160_v56, 0.0  ;;  %v308_v56 = vld [vmem:[%s940_s5 + $0x28] sm:$0xff] }
  0xb9   :  { %v162_v55 = vpop.f32.mrf.mxu0 }
  0xba   :  { %v163_v57 = vadd.f32 %v162_v55, %v93_v49  ;;  %v307_v55 = vld [vmem:[%s940_s5 + $0x20] sm:$0xff] }
  0xbc   :  { %v172_v59 = vmax.f32 %v163_v57, 0.0  ;;  %v309_v57 = vld [vmem:[%s940_s5 + $0x30] sm:$0xff] }
  0xbe   :  { %262 = vmatpush.msra.mxu1 %v172_v59 }
  0xc0   :  { %263 = vmatpush.msra.mxu1 %v171_v61 }
  0xc2   :  { %264 = vmatpush.msra.mxu1 %v170_v63 }
  0xc4   :  { %265 = vmatpush.msra.mxu1 %v169_v2  ;;  %v352_v2 = vpop.permute.xlu2 %351 }
  0xc6   :  { %266 = vmatpush.msra.mxu1 %v168_v6 }
  0xc8   :  { %267 = vmatpush.msra.mxu1 %v167_v8 }
  0xca   :  { %268 = vmatpush.msra.mxu1 %v166_v9 }
  0xcc   :  { %269 = vmatpush.msra.mxu1 %v165_v10  ;;  %v337_v9 = vpop.permute.xlu2 %336 }
  0xcd   :  { %605 = vmatmul.msk.f32.vlgmr.msra.gmra.mxu1 %vm229_vm2, %v173_v11 }
  0xd5   :  { %606 = vmatmul.msk.f32.gmra.mxu1 %vm229_vm2, %v174_v12 }
  0xdd   :  { %607 = vmatmul.msk.f32.gmra.mxu1 %vm229_vm2, %v175_v13 }
  0xe5   :  { %608 = vmatmul.msk.f32.gmra.mxu1 %vm229_vm2, %v176_v14 }
  0xed   :  { %609 = vmatmul.msk.f32.gmra.mxu1 %vm229_vm2, %v177_v15 }
  0xf5   :  { %610 = vmatmul.msk.f32.gmra.mxu1 %vm229_vm2, %v178_v16  ;;  %v332_v16 = vpop.permute.xlu0 %331 }
  0xfd   :  { %611 = vmatmul.msk.f32.gmra.mxu1 %vm229_vm2, %v179_v17 }
 0x105   :  { %612 = vmatmul.msk.f32.gmra.mxu1 %vm229_vm2, %v180_v18 }
 0x14a   :  { %v271_v19 = vpop.f32.mrf.mxu1 }
 0x14b   :  { %v272_v47 = vadd.f32 %v271_v19, %v192_v46  ;;  %v327_v19 = vpop.permute.xlu1 %326 }
 0x14d   :  { %v295_v50 = vmax.f32 %v272_v47, 0.0 }
 0x152   :  { %v274_v20 = vpop.f32.mrf.mxu1 }
 0x153   :  { %v275_v44 = vadd.f32 %v274_v20, %v197_v43 }
 0x155   :  { %v296_v49 = vmax.f32 %v275_v44, 0.0 }
 0x15a   :  { %v277_v21 = vpop.f32.mrf.mxu1 }
 0x15b   :  { %v278_v41 = vadd.f32 %v277_v21, %v202_v40 }
 0x15d   :  { %v297_v48 = vmax.f32 %v278_v41, 0.0  ;;  %v486_v41 = vpop.permute.xlu0 %485 }
 0x162   :  { %v280_v22 = vpop.f32.mrf.mxu1 }
 0x163   :  { %v281_v38 = vadd.f32 %v280_v22, %v207_v33  ;;  %v322_v22 = vpop.permute.xlu2 %321  ;;  %v438_v33 = vld [vmem:[%s941_s7 + $0x30] sm:$0xff] }
 0x165   :  { %v298_v45 = vmax.f32 %v281_v38, 0.0 }
 0x16a   :  { %v283_v23 = vpop.f32.mrf.mxu1 }
 0x16b   :  { %v284_v36 = vadd.f32 %v283_v23, %v212_v29  ;;  %v434_v29 = vld [vmem:[%s941_s7 + $0x10] sm:$0xff]  ;;  %v476_v44 = vpop.permute.xlu2 %475 }
 0x16d   :  { %v299_v42 = vmax.f32 %v284_v36, 0.0 }
 0x172   :  { %v286_v24 = vpop.f32.mrf.mxu1 }
 0x173   :  { %v287_v34 = vadd.f32 %v286_v24, %v217_v28  ;;  %v433_v28 = vld [vmem:[%s941_s7 + $0x8] sm:$0xff] }
 0x175   :  { %v300_v39 = vmax.f32 %v287_v34, 0.0  ;;  %v439_v34 = vld [vmem:[%s941_s7 + $0x38] sm:$0xff] }
 0x17a   :  { %v289_v27 = vpop.f32.mrf.mxu1 }
 0x17b   :  { %v290_v31 = vadd.f32 %v289_v27, %v222_v26  ;;  %v432_v27 = vld [vmem:[%s941_s7] sm:$0xff] }
 0x17d   :  { %v301_v37 = vmax.f32 %v290_v31, 0.0  ;;  %v436_v31 = vld [vmem:[%s941_s7 + $0x20] sm:$0xff] }
 0x182   :  { %v292_v30 = vpop.f32.mrf.mxu1 }
 0x183   :  { %v293_v32 = vadd.f32 %v292_v30, %v227_v25  ;;  %v435_v30 = vld [vmem:[%s941_s7 + $0x18] sm:$0xff] }
 0x185   :  { %v302_v35 = vmax.f32 %v293_v32, 0.0  ;;  %v437_v32 = vld [vmem:[%s941_s7 + $0x28] sm:$0xff] }
 0x187   :  { %391 = vmatpush.msra.mxu2 %v302_v35 }
 0x189   :  { %392 = vmatpush.msra.mxu2 %v301_v37 }
 0x18b   :  { %393 = vmatpush.msra.mxu2 %v300_v39 }
 0x18d   :  { %394 = vmatpush.msra.mxu2 %v299_v42  ;;  %v481_v42 = vpop.permute.xlu1 %480 }
 0x18f   :  { %395 = vmatpush.msra.mxu2 %v298_v45  ;;  %v471_v45 = vpop.permute.xlu0 %470 }
 0x191   :  { %396 = vmatpush.msra.mxu2 %v297_v48 }
 0x193   :  { %397 = vmatpush.msra.mxu2 %v296_v49 }
 0x195   :  { %398 = vmatpush.msra.mxu2 %v295_v50  ;;  %v466_v49 = vpop.permute.xlu1 %465 }
 0x196   :  { %613 = vmatmul.msk.f32.vlgmr.msra.gmra.mxu2 %vm229_vm2, %v303_v51 }
 0x19e   :  { %614 = vmatmul.msk.f32.gmra.mxu2 %vm229_vm2, %v304_v52 }
 0x1a6   :  { %615 = vmatmul.msk.f32.gmra.mxu2 %vm229_vm2, %v305_v53 }
 0x1ae   :  { %616 = vmatmul.msk.f32.gmra.mxu2 %vm229_vm2, %v306_v54 }
 0x1b6   :  { %617 = vmatmul.msk.f32.gmra.mxu2 %vm229_vm2, %v307_v55 }
 0x1be   :  { %618 = vmatmul.msk.f32.gmra.mxu2 %vm229_vm2, %v308_v56  ;;  %v461_v56 = vpop.permute.xlu2 %460 }
 0x1c6   :  { %619 = vmatmul.msk.f32.gmra.mxu2 %vm229_vm2, %v309_v57 }
 0x1ce   :  { %620 = vmatmul.msk.f32.gmra.mxu2 %vm229_vm2, %v310_v58 }
 0x219   :  { %v400_v59 = vpop.f32.mrf.mxu2 }
 0x21a   :  { %v401_v23 = vadd.f32 %v400_v59, %v322_v22  ;;  %v456_v59 = vpop.permute.xlu0 %455 }
 0x21c   :  { %v424_v26 = vmax.f32 %v401_v23, 0.0 }
 0x221   :  { %v403_v60 = vpop.f32.mrf.mxu2 }
 0x222   :  { %v404_v20 = vadd.f32 %v403_v60, %v327_v19 }
 0x224   :  { %v425_v25 = vmax.f32 %v404_v20, 0.0 }
 0x229   :  { %v406_v61 = vpop.f32.mrf.mxu2 }
 0x22a   :  { %v407_v17 = vadd.f32 %v406_v61, %v332_v16 }
 0x22c   :  { %v426_v24 = vmax.f32 %v407_v17, 0.0 }
 0x231   :  { %v409_v62 = vpop.f32.mrf.mxu2 }
 0x232   :  { %v410_v14 = vadd.f32 %v409_v62, %v337_v9  ;;  %v451_v62 = vpop.permute.xlu1 %450 }
 0x234   :  { %v427_v21 = vmax.f32 %v410_v14, 0.0 }
 0x239   :  { %v412_v63 = vpop.f32.mrf.mxu2 }
 0x23a   :  { %v413_v12 = vadd.f32 %v412_v63, %v342_v5 }
 0x23c   :  { %v428_v18 = vmax.f32 %v413_v12, 0.0 }
 0x241   :  { %v415_v0 = vpop.f32.mrf.mxu2 }
 0x242   :  { %v416_v10 = vadd.f32 %v415_v0, %v347_v4  ;;  %v566_v4 = vpop.permute.xlu2 %565 }
 0x244   :  { %v429_v15 = vmax.f32 %v416_v10, 0.0 }
 0x249   :  { %v418_v3 = vpop.f32.mrf.mxu2 }
 0x24a   :  { %v419_v7 = vadd.f32 %v418_v3, %v352_v2  ;;  %v561_v3 = vld [vmem:[%s942_s9] sm:$0x3] }
 0x24c   :  { %v430_v13 = vmax.f32 %v419_v7, 0.0 }
 0x251   :  { %v421_v6 = vpop.f32.mrf.mxu2 }
 0x252   :  { %v422_v8 = vadd.f32 %v421_v6, %v357_v1 }
 0x254   :  { %v431_v11 = vmax.f32 %v422_v8, 0.0 }
 0x256   :  { %520 = vmatpush.msra.mxu3 %v431_v11 }
 0x258   :  { %521 = vmatpush.msra.mxu3 %v430_v13 }
 0x25a   :  { %522 = vmatpush.msra.mxu3 %v429_v15 }
 0x25c   :  { %523 = vmatpush.msra.mxu3 %v428_v18 }
 0x25e   :  { %524 = vmatpush.msra.mxu3 %v427_v21 }
 0x260   :  { %525 = vmatpush.msra.mxu3 %v426_v24 }
 0x262   :  { %526 = vmatpush.msra.mxu3 %v425_v25 }
 0x264   :  { %527 = vmatpush.msra.mxu3 %v424_v26 }
 0x265   :  { %621 = vmatmul.msk.f32.vlgmr.msra.gmra.mxu3 %vm229_vm2, %v432_v27 }
 0x26d   :  { %622 = vmatmul.msk.f32.gmra.mxu3 %vm229_vm2, %v433_v28 }
 0x275   :  { %623 = vmatmul.msk.f32.gmra.mxu3 %vm229_vm2, %v434_v29 }
 0x27d   :  { %624 = vmatmul.msk.f32.gmra.mxu3 %vm229_vm2, %v435_v30 }
 0x285   :  { %625 = vmatmul.msk.f32.gmra.mxu3 %vm229_vm2, %v436_v31 }
 0x28d   :  { %626 = vmatmul.msk.f32.gmra.mxu3 %vm229_vm2, %v437_v32 }
 0x295   :  { %627 = vmatmul.msk.f32.gmra.mxu3 %vm229_vm2, %v438_v33 }
 0x29d   :  { %628 = vmatmul.msk.f32.gmra.mxu3 %vm229_vm2, %v439_v34 }
 0x2e8   :  { %v529_v35 = vpop.f32.mrf.mxu3 }
 0x2e9   :  { %v530_v63 = vadd.f32 %v529_v35, %v451_v62 }
 0x2eb   :  { %v553_v2 = vmax.f32 %v530_v63, 0.0 }
 0x2f0   :  { %v532_v36 = vpop.f32.mrf.mxu3 }
 0x2f1   :  { %v533_v60 = vadd.f32 %v532_v36, %v456_v59 }
 0x2f3   :  { %v554_v1 = vmax.f32 %v533_v60, 0.0 }
 0x2f8   :  { %v535_v37 = vpop.f32.mrf.mxu3 }
 0x2f9   :  { %v536_v57 = vadd.f32 %v535_v37, %v461_v56 }
 0x2fb   :  { %v555_v0 = vmax.f32 %v536_v57, 0.0 }
 0x300   :  { %v538_v38 = vpop.f32.mrf.mxu3 }
 0x301   :  { %v539_v54 = vadd.f32 %v538_v38, %v466_v49 }
 0x303   :  { %v556_v61 = vmax.f32 %v539_v54, 0.0 }
 0x308   :  { %v541_v39 = vpop.f32.mrf.mxu3 }
 0x309   :  { %v542_v52 = vadd.f32 %v541_v39, %v471_v45 }
 0x30b   :  { %v557_v58 = vmax.f32 %v542_v52, 0.0 }
 0x310   :  { %v544_v40 = vpop.f32.mrf.mxu3 }
 0x311   :  { %v545_v50 = vadd.f32 %v544_v40, %v476_v44 }
 0x313   :  { %v558_v55 = vmax.f32 %v545_v50, 0.0 }
 0x318   :  { %v547_v43 = vpop.f32.mrf.mxu3 }
 0x319   :  { %v548_v47 = vadd.f32 %v547_v43, %v481_v42 }
 0x31b   :  { %v559_v53 = vmax.f32 %v548_v47, 0.0 }
 0x320   :  { %v550_v46 = vpop.f32.mrf.mxu3 }
 0x321   :  { %v551_v48 = vadd.f32 %v550_v46, %v486_v41 }
 0x323   :  { %v560_v51 = vmax.f32 %v551_v48, 0.0 }
 0x325   :  { %579 = vmatpush.msrb.mxu0 %v560_v51 }
 0x327   :  { %580 = vmatpush.msrb.mxu0 %v559_v53 }
 0x329   :  { %581 = vmatpush.msrb.mxu0 %v558_v55 }
 0x32b   :  { %582 = vmatpush.msrb.mxu0 %v557_v58 }
 0x32d   :  { %583 = vmatpush.msrb.mxu0 %v556_v61 }
 0x32f   :  { %584 = vmatpush.msrb.mxu0 %v555_v0 }
 0x331   :  { %585 = vmatpush.msrb.mxu0 %v554_v1 }
 0x333   :  { %586 = vmatpush.msrb.mxu0 %v553_v2 }
 0x334   :  { %629 = vmatmul.msk.f32.vlgmr.msrb.gmra.mxu0 %vm229_vm2, %v561_v3 }
 0x3b1   :  { %v588_v5 = vpop.f32.mrf.mxu0 }
 0x3b2   :  { %v589_v6 = vadd.f32 %v588_v5, %v566_v4 }
 0x3b4   :  { %591 = vst [vmem:[%s943_s11] sm:$0x3] %v589_v6 }

</bundles_post_ra>
